<compile_context>
chip_gen: v5e
topology: v5e:2x2
jax: 0.10.0
libtpu: 0.0.40
codegen_flags: <defaults>
</compile_context>

<pallas_src>
import jax
import jax.numpy as jnp
from jax.experimental import pallas as pl
from jax.experimental.pallas import tpu as pltpu


def conv_bias_relu_kernel(p_ref, w_ref, b_ref, o_ref):
    # p_ref : (K9, Tl)     bf16  im2col patches chunk (K = cin*9 + 3*dy + dx)
    # w_ref : (Cout, K9)   bf16  flattened OIHW weights
    # b_ref : (Cout, 1)    f32
    # o_ref : (Cout, Tl)   bf16
    acc = jnp.dot(w_ref[...], p_ref[...], preferred_element_type=jnp.float32)
    acc = jnp.maximum(acc + b_ref[...], 0.0)          # bias + ReLU in f32
    o_ref[...] = acc.astype(o_ref.dtype)              # cast only at the store


def _pick_lane_tile(total_lanes, max_tile=8192):
    """Lane tile: multiple of 128 dividing total_lanes; prefer >=2 chunks (v7x dual TC),
    capped so double-buffered VMEM stays comfortably in budget on all generations."""
    if total_lanes % 128 != 0:
        return total_lanes  # full-extent block is always legal
    cands = [t for t in range(128, total_lanes + 1, 128)
             if total_lanes % t == 0 and t <= max_tile]
    multi = [t for t in cands if total_lanes // t >= 2]
    if multi:
        return max(multi)
    if cands:
        return max(cands)
    return total_lanes


def conv3x3_bias_relu(x_nchw, w_oihw, bias):
    """3x3 conv (pad=1) + bias + ReLU. Returns activations as (Cout, N*HW) bf16,
    lane index = n*HW + (h*W + w)."""
    N, Cin, H, W = x_nchw.shape
    Cout = w_oihw.shape[0]
    HW = H * W
    K9 = 9 * Cin
    total_lanes = N * HW

    # im2col in bf16 (halves wrapper HBM traffic). K ordering = (cin, dy, dx) to match
    # the OIHW weight flatten. Input is tiny, so the 9x duplication in HBM is free at
    # this size and it keeps all unaligned shifted slices out of the kernel.
    x_bf16 = x_nchw.astype(jnp.bfloat16)
    x_pad = jnp.pad(x_bf16, ((0, 0), (0, 0), (1, 1), (1, 1)))
    taps = [x_pad[:, :, dy:dy + H, dx:dx + W].reshape(N, Cin, HW)
            for dy in range(3) for dx in range(3)]
    patches = jnp.stack(taps, axis=2)                       # (N, Cin, 9, HW)
    patches = jnp.transpose(patches, (1, 2, 0, 3))          # (Cin, 9, N, HW)
    patches = patches.reshape(K9, total_lanes)              # (144, N*HW)

    w_mat = w_oihw.reshape(Cout, K9).astype(jnp.bfloat16)   # (Cout, Cin*3*3) OIHW flatten
    b_col = bias.reshape(Cout, 1).astype(jnp.float32)

    lane_tile = _pick_lane_tile(total_lanes)
    num_chunks = total_lanes // lane_tile

    return pl.pallas_call(
        conv_bias_relu_kernel,
        out_shape=jax.ShapeDtypeStruct((Cout, total_lanes), jnp.bfloat16),
        grid_spec=pltpu.PrefetchScalarGridSpec(
            num_scalar_prefetch=0,
            grid=(num_chunks,),
            in_specs=[
                pl.BlockSpec((K9, lane_tile), lambda l: (0, l)),
                pl.BlockSpec((Cout, K9), lambda l: (0, 0)),
                pl.BlockSpec((Cout, 1), lambda l: (0, 0)),
            ],
            out_specs=pl.BlockSpec((Cout, lane_tile), lambda l: (0, l)),
        ),
        compiler_params=pltpu.CompilerParams(
            dimension_semantics=("parallel",)),
    )(patches, w_mat, b_col)


def upsampling_block(x_nchw, w_oihw, bias):
    """Forward pass of UpSamplingBlock. x_nchw: (N, 16, H, W) -> (N, 16, 2H, 2W)."""
    N, Cin, H, W = x_nchw.shape
    Cout = w_oihw.shape[0]
    Co = Cout // 4

    act = conv3x3_bias_relu(x_nchw, w_oihw, bias)     # Pallas: (Cout, N*H*W) bf16
    act = act.reshape(Cout, N, H, W)

    # Pixel shuffle (factor 2): out[n, co, 2r+dr, 2c+dc] = act[4co+2dr+dc, n, r, c]
    # Pure lane/sublane interleave on a tiny bf16 tensor -> single XLA transpose.
    y = act.reshape(Co, 2, 2, N, H, W)
    y = jnp.transpose(y, (3, 0, 4, 1, 5, 2))          # (N, Co, H, 2, W, 2)
    return y.reshape(N, Co, 2 * H, 2 * W).astype(x_nchw.dtype)


upsampling_block_jit = jax.jit(upsampling_block)


def reference(x_nchw, w_oihw, bias):
    # Pure-JAX f32 reference (matches PyTorch semantics) for verification.
    out = jax.lax.conv_general_dilated(
        x_nchw, w_oihw, window_strides=(1, 1), padding=((1, 1), (1, 1)),
        dimension_numbers=('NCHW', 'OIHW', 'NCHW'))
    out = jnp.maximum(out + bias[None, :, None, None], 0.0)
    N, C, H, W = out.shape
    Co = C // 4
    y = out.reshape(N, Co, 2, 2, H, W)
    y = jnp.transpose(y, (0, 1, 4, 2, 5, 3))
    return y.reshape(N, Co, 2 * H, 2 * W)


if __name__ == "__main__":
    key = jax.random.PRNGKey(0)
    kx, kw, kb = jax.random.split(key, 3)

    N, Cin, H, W = 2, 16, 16, 16
    Cout = 64

    x = jax.random.normal(kx, (N, Cin, H, W), dtype=jnp.float32)            # NCHW like PyTorch
    w = jax.random.normal(kw, (Cout, Cin, 3, 3), dtype=jnp.float32) * 0.1   # OIHW like PyTorch
    b = jax.random.normal(kb, (Cout,), dtype=jnp.float32) * 0.1

    out = jax.block_until_ready(upsampling_block_jit(x, w, b))
    ref = jax.block_until_ready(reference(x, w, b))

    assert out.shape == (N, Cout // 4, 2 * H, 2 * W), out.shape
    # bf16 operands + bf16 output store (f32 accumulate) -> loose tolerance vs f32 ref.
    assert jnp.allclose(out, ref, atol=3e-2, rtol=3e-2), "mismatch vs reference"

    print("KERNEL_OK")
</pallas_src>

<mosaic_0001>
module attributes {stable_mosaic.version = 11 : i64} {
  func.func @conv_bias_relu_kernel(%arg0: i32, %arg1: memref<144x256xbf16, #tpu.memory_space<vmem>>, %arg2: memref<64x144xbf16, #tpu.memory_space<vmem>>, %arg3: memref<64x1xf32, #tpu.memory_space<vmem>>, %arg4: memref<64x256xbf16, #tpu.memory_space<vmem>>) attributes {dimension_semantics = [#tpu.dimension_semantics<parallel>], iteration_bounds = array<i64: 2>, scalar_prefetch = 0 : i64, scratch_operands = 0 : i64, tpu.core_type = #tpu.core_type<tc>, window_params = [{transform_indices = @transform_0, window_bounds = array<i64: 144, 256>}, {pipeline_mode = #tpu.pipeline_mode<synchronous>, transform_indices = @transform_1, window_bounds = array<i64: 64, 144>}, {pipeline_mode = #tpu.pipeline_mode<synchronous>, transform_indices = @transform_2, window_bounds = array<i64: 64, 1>}, {transform_indices = @transform_3, window_bounds = array<i64: 64, 256>}]} {
    %c0 = arith.constant 0 : index
    %c0_0 = arith.constant 0 : index
    %0 = vector.load %arg2[%c0, %c0_0] : memref<64x144xbf16, #tpu.memory_space<vmem>>, vector<64x144xbf16>
    %c0_1 = arith.constant 0 : index
    %c0_2 = arith.constant 0 : index
    %1 = vector.load %arg1[%c0_1, %c0_2] : memref<144x256xbf16, #tpu.memory_space<vmem>>, vector<144x256xbf16>
    %cst = arith.constant dense<0.000000e+00> : vector<64x256xf32>
    %2 = tpu.matmul %0, %1, %cst {dimension_numbers = #tpu.dot_dimension_numbers<[1], [0], [0], [1], [0, 0, 1, 1], [], []>} : vector<64x144xbf16>, vector<144x256xbf16>, vector<64x256xf32> -> vector<64x256xf32>
    %c0_3 = arith.constant 0 : index
    %c0_4 = arith.constant 0 : index
    %3 = vector.load %arg3[%c0_3, %c0_4] : memref<64x1xf32, #tpu.memory_space<vmem>>, vector<64x1xf32>
    %4 = vector.broadcast %3 : vector<64x1xf32> to vector<64x256xf32>
    %5 = arith.addf %2, %4 : vector<64x256xf32>
    %cst_5 = arith.constant 0.000000e+00 : f32
    %6 = vector.broadcast %cst_5 : f32 to vector<64x256xf32>
    %7 = arith.maximumf %5, %6 : vector<64x256xf32>
    %8 = arith.truncf %7 : vector<64x256xf32> to vector<64x256xbf16>
    %c0_6 = arith.constant 0 : index
    %c0_7 = arith.constant 0 : index
    %9 = vector.load %arg4[%c0_6, %c0_7] : memref<64x256xbf16, #tpu.memory_space<vmem>>, vector<64x256xbf16>
    tpu.vector_store %arg4[%c0_6, %c0_7], %8 {strides = array<i32>} : memref<64x256xbf16, #tpu.memory_space<vmem>>, vector<64x256xbf16>,
    return
  }
  func.func @transform_0(%arg0: i32) -> (i32, i32) {
    %c0_i32 = arith.constant 0 : i32
    %c0_i32_0 = arith.constant 0 : i32
    return %c0_i32, %arg0 : i32, i32
  }
  func.func @transform_1(%arg0: i32) -> (i32, i32) {
    %c0_i32 = arith.constant 0 : i32
    %c0_i32_0 = arith.constant 0 : i32
    %c0_i32_1 = arith.constant 0 : i32
    return %c0_i32, %c0_i32_0 : i32, i32
  }
  func.func @transform_2(%arg0: i32) -> (i32, i32) {
    %c0_i32 = arith.constant 0 : i32
    %c0_i32_0 = arith.constant 0 : i32
    %c0_i32_1 = arith.constant 0 : i32
    return %c0_i32, %c0_i32_0 : i32, i32
  }
  func.func @transform_3(%arg0: i32) -> (i32, i32) {
    %c0_i32 = arith.constant 0 : i32
    %c0_i32_0 = arith.constant 0 : i32
    return %c0_i32, %arg0 : i32, i32
  }
}

</mosaic_0001>

<bundles_post_ra>
// kernel: upsampling_block.1
= control target key start
LH: loop header
LB: loop body
LE: loop exit
PB: predicated region body
PF: predicated region fallthrough
CT: control target
= control target key end

     0   :  { %s988_s12 = smov 0   ;;  %s990_s13 = smov 0   ;;  %s1228_s0 = inlined_call_operand.vmem [shape: bf16[144,512], index: 0, kind: input, shape index: {}]   ;;  %s1229_s1 = inlined_call_operand.vmem [shape: bf16[64,144], index: 1, kind: input, shape index: {}]   ;;  %s1230_s2 = inlined_call_operand.vmem [shape: f32[64,1], index: 2, kind: input, shape index: {}]   ;;  %s1231_s3 = inlined_call_operand.vmem [shape: bf16[64,512], index: 3, kind: output, shape index: {}]  }
   0x1   :  { %s992_s14 = smov 0  }
   0x2 LB: > { %s760_s15 = sadd.s32 4294967295, %s965_s14   ;;  %s1005_s16 = sadd.s32 1, %s965_s14   ;;  %s965_s14 = sphi %s992_s14, %s1235_s14   ;;  %s961_s13 = sphi %s990_s13, %s1234_s13   ;;  %s957_s12 = sphi %s988_s12, %s1233_s12  }
   0x3   : > { %s17_s17 = ssub.s32 %s965_s14, %s1005_s16  ;;  %s20_s18 = sadd.s32 1, %s961_s13 }
   0x4   : > { %p18_p0 = scmp.eq.s32.totalorder %s17_s17, 0  ;;  %p27_p1 = scmp.ne.s32.totalorder %s961_s13, %s957_s12 }
   0x5   : > { %p28_p2 = scmp.eq.s32.totalorder %s965_s14, 0  ;;  %p99_p3 = scmp.eq.s32.totalorder %s760_s15, 1 }
   0x6   : > { %s1016_s19 = scalar_select %p18_p0, %s961_s13, %s20_s18  }
   0x7   : > { %p29_p4 = por %p28_p2, %p27_p1  ;;  %p1018_p5 = por %p99_p3, %p27_p1 }
   0x8   : > { %p763_p6 = scmp.ge.s32.totalorder %s965_s14, 2 }
   0xa   : > { %127 = sbr.rel (%p763_p6) target bundleno = 37 (0x25), region = 24 }
   0xf   : > { %130 = sbr.rel (!%p29_p4) target bundleno = 37 (0x25), region = 28  ;;  %s132_s21 = sand.u32 (%p29_p4), 1, %s961_s13  }
  0x10   : > { %s885_s22 = sshll.u32 (%p29_p4), %s965_s14, 3  ;;  %s913_s23 = smul.u32 (%p29_p4), 144, %s132_s21 }
  0x11   : > { %s1028_s26 = scalar_lea.vmem (%p29_p4), %s1228_s0, %s885_s22 }
  0x12   : > { %v200_v0 = vld [vmem:[%s1028_s26] sm:$0xff] (%p29_p4)  ;;  %v202_v1 = vld [vmem:[%s1028_s26 + $0x10] sm:$0xff] (%p29_p4)  ;;  %s1033_s27 = scalar_lea.vmem (%p29_p4), [#allocation2], %s913_s23 }
  0x13   : > { %v204_v2 = vld [vmem:[%s1028_s26 + $0x20] sm:$0xff] (%p29_p4)  ;;  %201 = vst [vmem:[%s1033_s27] sm:$0xff] (%p29_p4), %v200_v0  ;;  %v206_v3 = vld [vmem:[%s1028_s26 + $0x30] sm:$0xff] (%p29_p4) }
  0x14   : > { %203 = vst [vmem:[%s1033_s27 + $0x8] sm:$0xff] %v202_v1  ;;  %v208_v4 = vld [vmem:[%s1028_s26 + $0x40] sm:$0xff]  ;;  %v210_v5 = vld [vmem:[%s1028_s26 + $0x50] sm:$0xff] }
  0x15   : > { %205 = vst [vmem:[%s1033_s27 + $0x10] sm:$0xff] %v204_v2  ;;  %v212_v6 = vld [vmem:[%s1028_s26 + $0x60] sm:$0xff]  ;;  %v214_v7 = vld [vmem:[%s1028_s26 + $0x70] sm:$0xff] }
  0x16   : > { %207 = vst [vmem:[%s1033_s27 + $0x18] sm:$0xff] %v206_v3  ;;  %v216_v8 = vld [vmem:[%s1028_s26 + $0x80] sm:$0xff]  ;;  %v218_v9 = vld [vmem:[%s1028_s26 + $0x90] sm:$0xff] }
  0x17   : > { %209 = vst [vmem:[%s1033_s27 + $0x20] sm:$0xff] %v208_v4  ;;  %v220_v10 = vld [vmem:[%s1028_s26 + $0xa0] sm:$0xff]  ;;  %v222_v11 = vld [vmem:[%s1028_s26 + $0xb0] sm:$0xff] }
  0x18   : > { %211 = vst [vmem:[%s1033_s27 + $0x28] sm:$0xff] %v210_v5  ;;  %v224_v12 = vld [vmem:[%s1028_s26 + $0xc0] sm:$0xff]  ;;  %v226_v13 = vld [vmem:[%s1028_s26 + $0xd0] sm:$0xff] }
  0x19   : > { %213 = vst [vmem:[%s1033_s27 + $0x30] sm:$0xff] %v212_v6  ;;  %v228_v14 = vld [vmem:[%s1028_s26 + $0xe0] sm:$0xff]  ;;  %v230_v15 = vld [vmem:[%s1028_s26 + $0xf0] sm:$0xff] }
  0x1a   : > { %215 = vst [vmem:[%s1033_s27 + $0x38] sm:$0xff] %v214_v7  ;;  %v232_v16 = vld [vmem:[%s1028_s26 + $0x100] sm:$0xff]  ;;  %v234_v17 = vld [vmem:[%s1028_s26 + $0x110] sm:$0xff] }
  0x1b   : > { %217 = vst [vmem:[%s1033_s27 + $0x40] sm:$0xff] %v216_v8 }
  0x1c   : > { %219 = vst [vmem:[%s1033_s27 + $0x48] sm:$0xff] %v218_v9 }
  0x1d   : > { %221 = vst [vmem:[%s1033_s27 + $0x50] sm:$0xff] %v220_v10 }
  0x1e   : > { %223 = vst [vmem:[%s1033_s27 + $0x58] sm:$0xff] %v222_v11 }
  0x1f   : > { %225 = vst [vmem:[%s1033_s27 + $0x60] sm:$0xff] %v224_v12 }
  0x20   : > { %227 = vst [vmem:[%s1033_s27 + $0x68] sm:$0xff] %v226_v13 }
  0x21   : > { %229 = vst [vmem:[%s1033_s27 + $0x70] sm:$0xff] %v228_v14 }
  0x22   : > { %231 = vst [vmem:[%s1033_s27 + $0x78] sm:$0xff] %v230_v15 }
  0x23   : > { %233 = vst [vmem:[%s1033_s27 + $0x80] sm:$0xff] %v232_v16 }
  0x24   : > { %235 = vst [vmem:[%s1033_s27 + $0x88] sm:$0xff] %v234_v17 }
  0x25 PF: > { %p766_p7 = scmp.ge.s32.totalorder %s965_s14, 1  ;;  %p240_p8 = scmp.lt.s32.totalorder %s965_s14, 3 }
  0x27   : > { %p241_p9 = pnand %p766_p7, %p240_p8 }
  0x28   : > { %s247_s28 = sand.u32 (!%p241_p9), 1, %s957_s12  }
  0x29   : > { %244 = sbr.rel (%p241_p9) target bundleno = 286 (0x11e), region = 66  ;;  %s767_s21 = sshll.u32 (!%p241_p9), %s247_s28, 6 }
  0x2a   : > { %s914_s29 = smul.u32 (!%p241_p9), 144, %s247_s28  ;;  %s1193_s22 = scalar_lea.vmem (!%p241_p9), [#allocation3], %s767_s21 }
  0x2c   : > { %s1073_s30 = scalar_lea.vmem (!%p241_p9), [#allocation2], %s914_s29 }
  0x2e   : > { %v858_v18 = vld [vmem:[%s1073_s30 + $0x70] sm:$0xf]  ;;  %v909_v19 = vld [vmem:[%s1073_s30 + $0x74] sm:$0xf0]  ;;  %v908_v20 = vld [vmem:[%s1073_s30 + $0x74] sm:$0xf] }
  0x2f   : > { %v859_v21 = vor.u32 %v909_v19, %v858_v18  ;;  %v860_v22 = vld [vmem:[%s1073_s30 + $0x78] sm:$0xf0]  ;;  %v850_v23 = vld [vmem:[%s1073_s30 + $0x60] sm:$0xf]  ;;  %v907_v24 = vld [vmem:[%s1073_s30 + $0x64] sm:$0xf0] }
  0x30   : > { %v863_v25 = vor.u32 %v908_v20, %v860_v22  ;;  %v906_v26 = vld [vmem:[%s1073_s30 + $0x64] sm:$0xf]  ;;  %v852_v27 = vld [vmem:[%s1073_s30 + $0x68] sm:$0xf0]  ;;  %v851_v28 = vor.u32 %v907_v24, %v850_v23  ;;  %v842_v30 = vld [vmem:[%s1073_s30 + $0x50] sm:$0xf] }
  0x31   : > { %485 = vmatpush.bf16.msra.mxu0 %v859_v21  ;;  %v855_v29 = vor.u32 %v906_v26, %v852_v27  ;;  %v905_v31 = vld [vmem:[%s1073_s30 + $0x54] sm:$0xf0]  ;;  %v904_v32 = vld [vmem:[%s1073_s30 + $0x54] sm:$0xf]  ;;  %v844_v33 = vld [vmem:[%s1073_s30 + $0x58] sm:$0xf0] }
  0x32   : > { %543 = vmatpush.bf16.msra.mxu2 %v863_v25  ;;  %v843_v34 = vor.u32 %v905_v31, %v842_v30  ;;  %v834_v35 = vld [vmem:[%s1073_s30 + $0x40] sm:$0xf]  ;;  %v886_v36 = vld [vmem:[%s1229_s1 + $0x4] sm:$0xf]  ;;  %v772_v37 = vld [vmem:[%s1229_s1 + $0x8] sm:$0xf0]  ;;  %v847_v38 = vor.u32 %v904_v32, %v844_v33 }
  0x33   : > { %v903_v39 = vld [vmem:[%s1073_s30 + $0x44] sm:$0xf0]  ;;  %v910_v40 = vld [vmem:[%s1073_s30 + $0x84] sm:$0xf]  ;;  %v868_v41 = vld [vmem:[%s1073_s30 + $0x88] sm:$0xf0]  ;;  %v775_v45 = vor.u32 %v886_v36, %v772_v37 }
  0x34   : > { %v902_v42 = vld [vmem:[%s1073_s30 + $0x44] sm:$0xf]  ;;  %v836_v43 = vld [vmem:[%s1073_s30 + $0x48] sm:$0xf0]  ;;  %v871_v44 = vor.u32 %v910_v40, %v868_v41  ;;  %v866_v46 = vld [vmem:[%s1073_s30 + $0x80] sm:$0xf]  ;;  %v835_v47 = vor.u32 %v903_v39, %v834_v35 }
  0x35   : > { %486 = vmatpush.bf16.msra.mxu0 %v851_v28  ;;  %vm472_vm0 = vcmask 130048   ;;  %v911_v48 = vld [vmem:[%s1073_s30 + $0x84] sm:$0xf0]  ;;  %v839_v49 = vor.u32 %v902_v42, %v836_v43  ;;  %v826_v50 = vld [vmem:[%s1073_s30 + $0x30] sm:$0xf]  ;;  %v967_v56 = vmov 0  }
  0x36   : > { %544 = vmatpush.bf16.msra.mxu2 %v855_v29  ;;  %579 = vmatpush.bf16.msra.mxu3 %v871_v44  ;;  %v901_v51 = vld [vmem:[%s1073_s30 + $0x34] sm:$0xf0]  ;;  %v867_v52 = vor.u32 %v911_v48, %v866_v46  ;;  %v298_v53 = vld [vmem:[%s1230_s2] sm:$0xff]  ;;  %v828_v55 = vld [vmem:[%s1073_s30 + $0x38] sm:$0xf0]  ;;  %s912_s12 = sshll.u32 (%p1018_p5), %s760_s15, 3 }
  0x37   : > { %v900_v54 = vld [vmem:[%s1073_s30 + $0x34] sm:$0xf]  ;;  %940 = vset.pattern.permute.xlu0 %v967_v56  ;;  %941 = vset.pattern.permute.xlu1 %v967_v56  ;;  %v827_v57 = vor.u32 %v901_v51, %v826_v50  ;;  %v818_v59 = vld [vmem:[%s1073_s30 + $0x20] sm:$0xf]  ;;  %v899_v60 = vld [vmem:[%s1073_s30 + $0x24] sm:$0xf0]  ;;  %s642_s24 = scalar_lea.vmem (%p1018_p5), %s1231_s3, %s912_s12 }
  0x38   : > { %521 = vmatpush.bf16.msra.mxu1 %v867_v52  ;;  %308 = vperm.xlu0 %940, %v298_v53   ;;  %v831_v58 = vor.u32 %v900_v54, %v828_v55  ;;  %v898_v61 = vld [vmem:[%s1073_s30 + $0x24] sm:$0xf]  ;;  %v820_v62 = vld [vmem:[%s1073_s30 + $0x28] sm:$0xf0]  ;;  %v819_v63 = vor.u32 %v899_v60, %v818_v59  ;;  %v810_v0 = vld [vmem:[%s1073_s30 + $0x10] sm:$0xf] }
  0x39   : > { %487 = vmatpush.bf16.msra.mxu0 %v843_v34  ;;  %876 = vmatmul.msk.bf16.vlgmr.msra.gmra.mxu3 %vm472_vm0, %v775_v45  ;;  %v823_v1 = vor.u32 %v898_v61, %v820_v62  ;;  %v897_v2 = vld [vmem:[%s1073_s30 + $0x14] sm:$0xf0]  ;;  %v300_v4 = vld [vmem:[%s1230_s2 + $0x10] sm:$0xff]  ;;  %v812_v6 = vld [vmem:[%s1073_s30 + $0x18] sm:$0xf0] }
  0x3a   : > { %545 = vmatpush.bf16.msra.mxu2 %v847_v38  ;;  %942 = vset.pattern.permute.xlu2 %v967_v56  ;;  %v299_v3 = vld [vmem:[%s1230_s2 + $0x8] sm:$0xff]  ;;  %v896_v5 = vld [vmem:[%s1073_s30 + $0x14] sm:$0xf]  ;;  %v811_v7 = vor.u32 %v897_v2, %v810_v0  ;;  %v780_v9 = vld [vmem:[%s1229_s1 + $0x18] sm:$0xf0] }
  0x3b   : > { %872 = vmatmul.msk.bf16.vlgmr.msra.gmra.mxu1 %vm472_vm0, %v775_v45  ;;  %318 = vperm.xlu1 %941, %v300_v4   ;;  %v888_v8 = vld [vmem:[%s1229_s1 + $0x14] sm:$0xf]  ;;  %v815_v10 = vor.u32 %v896_v5, %v812_v6  ;;  %v802_v11 = vld [vmem:[%s1073_s30] sm:$0xf]  ;;  %v895_v12 = vld [vmem:[%s1073_s30 + $0x4] sm:$0xf0] }
  0x3c   : > { %v894_v13 = vld [vmem:[%s1073_s30 + $0x4] sm:$0xf]  ;;  %v804_v14 = vld [vmem:[%s1073_s30 + $0x8] sm:$0xf0]  ;;  %v783_v15 = vor.u32 %v888_v8, %v780_v9  ;;  %v803_v16 = vor.u32 %v895_v12, %v802_v11  ;;  %v770_v17 = vld [vmem:[%s1229_s1] sm:$0xf] }
  0x3d   : > { %488 = vmatpush.bf16.msra.mxu0 %v835_v47  ;;  %v887_v18 = vld [vmem:[%s1229_s1 + $0x4] sm:$0xf0]  ;;  %v807_v19 = vor.u32 %v894_v13, %v804_v14  ;;  %v301_v21 = vld [vmem:[%s1230_s2 + $0x18] sm:$0xff]  ;;  %v890_v22 = vld [vmem:[%s1229_s1 + $0x24] sm:$0xf] }
  0x3e   : > { %546 = vmatpush.bf16.msra.mxu2 %v839_v49  ;;  %v771_v20 = vor.u32 %v887_v18, %v770_v17  ;;  %v788_v23 = vld [vmem:[%s1229_s1 + $0x28] sm:$0xf0]  ;;  %v778_v25 = vld [vmem:[%s1229_s1 + $0x10] sm:$0xf]  ;;  %v889_v26 = vld [vmem:[%s1229_s1 + $0x14] sm:$0xf0] }
  0x3f   : > { %v791_v24 = vor.u32 %v890_v22, %v788_v23  ;;  %v779_v27 = vor.u32 %v889_v26, %v778_v25  ;;  %v305_v28 = vld [vmem:[%s1230_s2 + $0x38] sm:$0xff]  ;;  %v304_v29 = vld [vmem:[%s1230_s2 + $0x30] sm:$0xff]  ;;  %v302_v30 = vld [vmem:[%s1230_s2 + $0x20] sm:$0xff] }
  0x40   : > { %313 = vperm.xlu0 %940, %v299_v3   ;;  %328 = vperm.xlu2 %942, %v302_v30   ;;  %v892_v31 = vld [vmem:[%s1229_s1 + $0x34] sm:$0xf]  ;;  %v796_v32 = vld [vmem:[%s1229_s1 + $0x38] sm:$0xf0]  ;;  %v303_v34 = vld [vmem:[%s1230_s2 + $0x28] sm:$0xff] }
  0x41   : > { %489 = vmatpush.bf16.msra.mxu0 %v827_v57  ;;  %v799_v33 = vor.u32 %v892_v31, %v796_v32  ;;  %v786_v35 = vld [vmem:[%s1229_s1 + $0x20] sm:$0xf]  ;;  %v891_v36 = vld [vmem:[%s1229_s1 + $0x24] sm:$0xf0]  ;;  %v794_v38 = vld [vmem:[%s1229_s1 + $0x30] sm:$0xf] }
  0x42   : > { %547 = vmatpush.bf16.msra.mxu2 %v831_v58  ;;  %v787_v37 = vor.u32 %v891_v36, %v786_v35  ;;  %v893_v39 = vld [vmem:[%s1229_s1 + $0x34] sm:$0xf0] }
  0x43   : > { %323 = vperm.xlu1 %941, %v301_v21   ;;  %v795_v40 = vor.u32 %v893_v39, %v794_v38 }
  0x45   : > { %490 = vmatpush.bf16.msra.mxu0 %v819_v63 }
  0x46   : > { %548 = vmatpush.bf16.msra.mxu2 %v823_v1 }
  0x48   : > { %338 = vperm.xlu0 %940, %v304_v29   ;;  %333 = vperm.xlu2 %942, %v303_v34  }
  0x49   : > { %491 = vmatpush.bf16.msra.mxu0 %v811_v7  ;;  %877 = vmatmul.msk.bf16.gmra.mxu3 %vm472_vm0, %v783_v15 }
  0x4a   : > { %549 = vmatpush.bf16.msra.mxu2 %v815_v10 }
  0x4b   : > { %873 = vmatmul.msk.bf16.gmra.mxu1 %vm472_vm0, %v783_v15  ;;  %343 = vperm.xlu1 %941, %v305_v28  }
  0x4d   : > { %492 = vmatpush.bf16.msra.mxu0 %v803_v16 }
  0x4e   : > { %550 = vmatpush.bf16.msra.mxu2 %v807_v19 }
  0x50   : > { %493 = vmatmul.bf16.vlgmr.msra.gmra.mxu0 %v771_v20 }
  0x51   : > { %551 = vmatmul.bf16.vlgmr.msra.gmra.mxu2 %v771_v20 }
  0x59   : > { %878 = vmatmul.msk.bf16.gmra.mxu3 %vm472_vm0, %v791_v24 }
  0x5b   : > { %874 = vmatmul.msk.bf16.gmra.mxu1 %vm472_vm0, %v791_v24 }
  0x60   : > { %498 = vmatmul.bf16.gmra.mxu0 %v779_v27 }
  0x61   : > { %556 = vmatmul.bf16.gmra.mxu2 %v779_v27 }
  0x69   : > { %879 = vmatmul.msk.bf16.gmra.mxu3 %vm472_vm0, %v799_v33 }
  0x6b   : > { %875 = vmatmul.msk.bf16.gmra.mxu1 %vm472_vm0, %v799_v33 }
  0x70   : > { %503 = vmatmul.bf16.gmra.mxu0 %v787_v37 }
  0x71   : > { %561 = vmatmul.bf16.gmra.mxu2 %v787_v37 }
  0x80   : > { %508 = vmatmul.bf16.gmra.mxu0 %v795_v40 }
  0x81   : > { %566 = vmatmul.bf16.gmra.mxu2 %v795_v40 }
  0x9a   : > { %v329_v19 = vpop.permute.xlu2 %328 }
  0xa2   : > { %v334_v34 = vpop.permute.xlu2 %333 }
  0xaa   : > { %v309_v43 = vpop.permute.xlu0 %308 }
  0xad   : > { %v319_v59 = vpop.permute.xlu1 %318 }
  0xb2   : > { %v314_v52 = vpop.permute.xlu0 %313 }
  0xb5   : > { %v324_v11 = vpop.permute.xlu1 %323 }
  0xb8   : > { %v523_v41 = vpop.f32.mrf.mxu1 }
  0xbc   : > { %v581_v42 = vpop.f32.mrf.mxu3 }
  0xc0   : > { %v525_v46 = vpop.f32.mrf.mxu1 }
  0xc4   : > { %v583_v47 = vpop.f32.mrf.mxu3 }
  0xc8   : > { %v528_v57 = vpop.f32.mrf.mxu1 }
  0xcc   : > { %v586_v61 = vpop.f32.mrf.mxu3 }
  0xcd   : > { %v494_v44 = vpop.f32.mrf.mxu0 }
  0xce   : > { %v495_v45 = vadd.f32 %v494_v44, %v309_v43 }
  0xd0   : > { %v524_v48 = vadd.f32 %v523_v41, %v495_v45  ;;  %v530_v8 = vpop.f32.mrf.mxu1 }
  0xd2   : > { %v601_v53 = vmax.f32 %v524_v48, 0.0 }
  0xd4   : > { %v552_v49 = vpop.f32.mrf.mxu2  ;;  %v588_v12 = vpop.f32.mrf.mxu3 }
  0xd5   : > { %v553_v50 = vadd.f32 %v552_v49, %v309_v43  ;;  %v496_v51 = vpop.f32.mrf.mxu0 }
  0xd6   : > { %v497_v56 = vadd.f32 %v496_v51, %v314_v52 }
  0xd7   : > { %v582_v54 = vadd.f32 %v581_v42, %v553_v50 }
  0xd8   : > { %v526_v62 = vadd.f32 %v525_v46, %v497_v56  ;;  %v533_v23 = vpop.f32.mrf.mxu1 }
  0xd9   : > { %v602_v55 = vmax.f32 %v582_v54, 0.0 }
  0xda   : > { %v603_v3 = vmax.f32 %v526_v62, 0.0 }
  0xdb   : > { %v617_v58 = vpack.c.bf16 %v602_v55, %v601_v53 }
  0xdc   : > { %v554_v60 = vpop.f32.mrf.mxu2  ;;  %v591_v26 = vpop.f32.mrf.mxu3 }
  0xdd   : > { %625 = vst [vmem:[%s1193_s22] sm:$0xff] %v617_v58  ;;  %v555_v63 = vadd.f32 %v554_v60, %v314_v52  ;;  %v499_v0 = vpop.f32.mrf.mxu0 }
  0xde   : > { %v500_v2 = vadd.f32 %v499_v0, %v319_v59 }
  0xdf   : > { %v584_v1 = vadd.f32 %v583_v47, %v555_v63  ;;  %v339_v47 = vpop.permute.xlu0 %338 }
  0xe0   : > { %v529_v6 = vadd.f32 %v528_v57, %v500_v2  ;;  %v535_v37 = vpop.f32.mrf.mxu1 }
  0xe1   : > { %v604_v4 = vmax.f32 %v584_v1, 0.0 }
  0xe2   : > { %v605_v13 = vmax.f32 %v529_v6, 0.0 }
  0xe3   : > { %v618_v5 = vpack.c.bf16 %v604_v4, %v603_v3 }
  0xe4   : > { %v557_v7 = vpop.f32.mrf.mxu2  ;;  %v593_v40 = vpop.f32.mrf.mxu3 }
  0xe5   : > { %626 = vst [vmem:[%s1193_s22 + $0x8] sm:$0xff] %v618_v5  ;;  %v558_v9 = vadd.f32 %v557_v7, %v319_v59  ;;  %v501_v10 = vpop.f32.mrf.mxu0  ;;  %v344_v59 = vpop.permute.xlu1 %343 }
  0xe6   : > { %v502_v16 = vadd.f32 %v501_v10, %v324_v11 }
  0xe7   : > { %v587_v14 = vadd.f32 %v586_v61, %v558_v9  ;;  %v685_v9 = vld [vmem:[%s1193_s22] sm:$0xff] (%p1018_p5) }
  0xe8   : > { %v531_v20 = vadd.f32 %v530_v8, %v502_v16  ;;  %v538_v51 = vpop.f32.mrf.mxu1  ;;  %686 = vst [vmem:[%s642_s24] sm:$0xff] (%p1018_p5), %v685_v9 }
  0xe9   : > { %v606_v15 = vmax.f32 %v587_v14, 0.0 }
  0xea   : > { %v607_v27 = vmax.f32 %v531_v20, 0.0 }
  0xeb   : > { %v619_v17 = vpack.c.bf16 %v606_v15, %v605_v13 }
  0xec   : > { %v559_v18 = vpop.f32.mrf.mxu2  ;;  %v596_v53 = vpop.f32.mrf.mxu3  ;;  %v687_v10 = vld [vmem:[%s1193_s22 + $0x8] sm:$0xff] (%p1018_p5) }
  0xed   : > { %627 = vst [vmem:[%s1193_s22 + $0x10] sm:$0xff] %v619_v17  ;;  %v560_v21 = vadd.f32 %v559_v18, %v324_v11  ;;  %v504_v22 = vpop.f32.mrf.mxu0 }
  0xee   : > { %v505_v25 = vadd.f32 %v504_v22, %v329_v19  ;;  %688 = vst [vmem:[%s642_s24 + $0x10] sm:$0xff] (%p1018_p5), %v687_v10 }
  0xef   : > { %v589_v24 = vadd.f32 %v588_v12, %v560_v21 }
  0xf0   : > { %v534_v30 = vadd.f32 %v533_v23, %v505_v25  ;;  %v540_v0 = vpop.f32.mrf.mxu1 }
  0xf1   : > { %v608_v28 = vmax.f32 %v589_v24, 0.0 }
  0xf2   : > { %v609_v35 = vmax.f32 %v534_v30, 0.0 }
  0xf3   : > { %v620_v29 = vpack.c.bf16 %v608_v28, %v607_v27 }
  0xf4   : > { %v562_v31 = vpop.f32.mrf.mxu2  ;;  %v598_v4 = vpop.f32.mrf.mxu3  ;;  %v689_v11 = vld [vmem:[%s1193_s22 + $0x10] sm:$0xff] (%p1018_p5) }
  0xf5   : > { %628 = vst [vmem:[%s1193_s22 + $0x18] sm:$0xff] %v620_v29  ;;  %v563_v32 = vadd.f32 %v562_v31, %v329_v19  ;;  %v506_v33 = vpop.f32.mrf.mxu0 }
  0xf6   : > { %v507_v39 = vadd.f32 %v506_v33, %v334_v34  ;;  %690 = vst [vmem:[%s642_s24 + $0x20] sm:$0xff] (%p1018_p5), %v689_v11 }
  0xf7   : > { %v592_v36 = vadd.f32 %v591_v26, %v563_v32 }
  0xf8   : > { %v536_v43 = vadd.f32 %v535_v37, %v507_v39 }
  0xf9   : > { %v610_v38 = vmax.f32 %v592_v36, 0.0 }
  0xfa   : > { %v611_v48 = vmax.f32 %v536_v43, 0.0 }
  0xfb   : > { %v621_v41 = vpack.c.bf16 %v610_v38, %v609_v35 }
  0xfc   : > { %v564_v42 = vpop.f32.mrf.mxu2  ;;  %v691_v12 = vld [vmem:[%s1193_s22 + $0x18] sm:$0xff] (%p1018_p5) }
  0xfd   : > { %629 = vst [vmem:[%s1193_s22 + $0x20] sm:$0xff] %v621_v41  ;;  %v565_v44 = vadd.f32 %v564_v42, %v334_v34  ;;  %v509_v45 = vpop.f32.mrf.mxu0 }
  0xfe   : > { %v510_v50 = vadd.f32 %v509_v45, %v339_v47  ;;  %692 = vst [vmem:[%s642_s24 + $0x30] sm:$0xff] (%p1018_p5), %v691_v12 }
  0xff   : > { %v594_v46 = vadd.f32 %v593_v40, %v565_v44 }
 0x100   : > { %v539_v55 = vadd.f32 %v538_v51, %v510_v50 }
 0x101   : > { %v612_v49 = vmax.f32 %v594_v46, 0.0 }
 0x102   : > { %v613_v60 = vmax.f32 %v539_v55, 0.0 }
 0x103   : > { %v622_v52 = vpack.c.bf16 %v612_v49, %v611_v48 }
 0x104   : > { %v567_v54 = vpop.f32.mrf.mxu2  ;;  %v693_v13 = vld [vmem:[%s1193_s22 + $0x20] sm:$0xff] (%p1018_p5) }
 0x105   : > { %630 = vst [vmem:[%s1193_s22 + $0x28] sm:$0xff] %v622_v52  ;;  %v568_v56 = vadd.f32 %v567_v54, %v339_v47  ;;  %v511_v57 = vpop.f32.mrf.mxu0 }
 0x106   : > { %v512_v62 = vadd.f32 %v511_v57, %v344_v59  ;;  %694 = vst [vmem:[%s642_s24 + $0x40] sm:$0xff] (%p1018_p5), %v693_v13 }
 0x107   : > { %v597_v58 = vadd.f32 %v596_v53, %v568_v56 }
 0x108   : > { %v541_v2 = vadd.f32 %v540_v0, %v512_v62 }
 0x109   : > { %v614_v61 = vmax.f32 %v597_v58, 0.0 }
 0x10a   : > { %v615_v6 = vmax.f32 %v541_v2, 0.0 }
 0x10b   : > { %v623_v63 = vpack.c.bf16 %v614_v61, %v613_v60 }
 0x10c   : > { %v569_v1 = vpop.f32.mrf.mxu2  ;;  %v695_v14 = vld [vmem:[%s1193_s22 + $0x28] sm:$0xff] (%p1018_p5) }
 0x10d   : > { %631 = vst [vmem:[%s1193_s22 + $0x30] sm:$0xff] %v623_v63  ;;  %v570_v3 = vadd.f32 %v569_v1, %v344_v59 }
 0x10e   : > { %696 = vst [vmem:[%s642_s24 + $0x50] sm:$0xff] (%p1018_p5), %v695_v14 }
 0x10f   : > { %v599_v5 = vadd.f32 %v598_v4, %v570_v3 }
 0x111   : > { %v616_v7 = vmax.f32 %v599_v5, 0.0  ;;  %639 = sbr.rel (!%p1018_p5) target bundleno = 286 (0x11e), region = 74 }
 0x113   : > { %v624_v8 = vpack.c.bf16 %v616_v7, %v615_v6 }
 0x114   : > { %v697_v15 = vld [vmem:[%s1193_s22 + $0x30] sm:$0xff] (%p1018_p5) }
 0x115   : > { %632 = vst [vmem:[%s1193_s22 + $0x38] sm:$0xff] %v624_v8 }
 0x116   : > { %698 = vst [vmem:[%s642_s24 + $0x60] sm:$0xff] %v697_v15 }
 0x11c   : > { %v699_v16 = vld [vmem:[%s1193_s22 + $0x38] sm:$0xff] }
 0x11d   : > { %700 = vst [vmem:[%s642_s24 + $0x70] sm:$0xff] %v699_v16 }
 0x11e PF: > { %p10_p10 = scmp.ge.s32.totalorder %s1005_s16, 4   ;;  %s1233_s12 = smov %s961_s13 }
 0x11f   : > { %s1234_s13 = smov %s1016_s19  ;;  %s1235_s14 = smov %s1005_s16 }
 0x120   :  { %12 = sbr.rel (!%p10_p10) target bundleno = 2 (0x2), region = 143 }

</bundles_post_ra>
